<compile_context>
chip_gen: v7x
topology: tpu7x:2x2x1
jax: 0.10.0
libtpu: 0.0.40
codegen_flags: <defaults>
</compile_context>

<pallas_src>
import numpy as np
import jax
import jax.numpy as jnp
from jax import lax
from jax.experimental import pallas as pl
from jax.experimental.pallas import tpu as pltpu

# Gaussian kernel bandwidth multipliers (the "kernel module parameters").
ALPHAS = (0.5, 1.0, 2.0)


def _default_vmem_limit_bytes() -> int:
    """~half of physical VMEM: 64 MiB on v5e/v6e (128 MiB phys), 32 MiB on v7x (64 MiB phys)."""
    try:
        cap = pltpu.get_tpu_info().vmem_capacity_bytes
        return int(min(96 * 2**20, max(32 * 2**20, cap // 2)))
    except Exception:
        return 32 * 2**20


def _pick_tile(batch_size: int, n: int, target: int):
    """One square tile size for the (N, N) pair space (N = 2*batch_size).

    Preference:
      1. multiple of 128 (lane aligned, bf16-sublane friendly) that divides batch_size
         -> no tile straddles the source/target boundary -> scalar index weights,
      2. multiple of 128 that divides n,
      3. full extent n.
    Returns (tile, boundary_aligned).
    """
    cap = max(128, (target // 128) * 128)
    t = cap
    while t >= 128:
        if batch_size % t == 0:
            return t, True
        t -= 128
    t = cap
    while t >= 128:
        if n % t == 0:
            return t, False
        t -= 128
    # TODO(synk): for large awkward N, pad features to a multiple of 128 with zero-weighted
    # rows/cols instead of falling back to a single full-extent tile.
    return n, False


def _make_kernel(batch_size: int, tile: int, linear: bool, scalar_w: bool, sym: bool):
    pos = 1.0 / float(batch_size * (batch_size - 1))
    neg = -1.0 / float(batch_size * batch_size)
    inv_b = 1.0 / float(batch_size)

    def kernel(ssq_col_ref, ssq_row_ref, xi_ref, xj_ref, out_ref):
        i = pl.program_id(0)
        j = pl.program_id(1)

        # Per-row-tile resident accumulator block: zero at the start of each inner (j) loop.
        @pl.when(j == 0)
        def _init():
            out_ref[...] = jnp.zeros_like(out_ref)

        def _compute():
            # Gram of the pre-scaled feature tiles on the MXU (bf16 feed by default).
            # Features were scaled by sqrt(0.5/mean_dist) in the wrapper, so this dot already
            # carries the +0.5/mean_dist coefficient of the exponent.
            g = lax.dot_general(
                xi_ref[...], xj_ref[...],
                (((1,), (1,)), ((), ())),
                preferred_element_type=jnp.float32)                      # (t, t) f32

            # exponent = -0.25/m * (||xi||^2 + ||xj||^2) + 0.5/m * <xi, xj>, clamped <= 0
            # (norm terms were pre-scaled in the wrapper; clamp guards fp cancellation).
            expo = jnp.minimum(g + ssq_col_ref[...] + ssq_row_ref[...], 0.0)

            # Fused 3-kernel bank for alphas {0.5, 1, 2}: e + e^2 + e^4, one EUP exp.
            e = jnp.exp(expo)
            e2 = e * e
            kmat = e + e2 + e2 * e2

            if scalar_w:
                # Tiles never straddle the source/target boundary -> one scalar weight per tile.
                rs = (i * tile) < batch_size
                cs = (j * tile) < batch_size
                w = jnp.where(rs == cs, pos, neg)
                tile_sum = w * jnp.sum(kmat)
            else:
                # Per-element analytic index-matrix weights (linear variant / unaligned tiles).
                r = i * tile + lax.broadcasted_iota(jnp.int32, (tile, tile), 0)
                c = j * tile + lax.broadcasted_iota(jnp.int32, (tile, tile), 1)
                rs = r < batch_size
                cs = c < batch_size
                if not linear:
                    w = jnp.where(rs == cs, pos, neg)
                else:
                    rb = jnp.where(rs, r, r - batch_size)
                    cb = jnp.where(cs, c, c - batch_size)
                    nxt = jnp.where(rb == batch_size - 1, 0, rb + 1)      # (rb + 1) % B
                    prv = jnp.where(rb == 0, batch_size - 1, rb - 1)      # (rb - 1) % B
                    w_same = jnp.where(cb == nxt, inv_b, 0.0)
                    w_cross = jnp.where((cb == nxt) | (cb == prv), -inv_b, 0.0)
                    w_cross = jnp.where(rs & jnp.logical_not(cs), w_cross, 0.0)
                    w = jnp.where(rs == cs, w_same, w_cross)
                tile_sum = jnp.sum(kmat * w)

            if sym:
                # Upper-triangular tiles only: off-diagonal tiles counted twice.
                tile_sum = tile_sum * jnp.where(j > i, 2.0, 1.0)

            out_ref[...] += tile_sum

        if sym:
            # kmat * w is symmetric for linear=False -> skip the strict lower triangle.
            pl.when(j >= i)(_compute)
        else:
            _compute()

    return kernel


def mk_mmd(z_s: jax.Array, z_t: jax.Array, linear: bool = False,
           tile_target: int = 256, use_bf16_gram: bool = True,
           vmem_limit_bytes: int | None = None) -> jax.Array:
    """Forward pass of MultipleKernelMaximumMeanDiscrepancy. Returns a scalar loss.

    tile_target: pair-space tile (multiple of 128); 512 is a good choice on v6e (128 MiB VMEM).
    use_bf16_gram: feed the MXU in bf16 (features are mean-centered so this is numerically safe).
    """
    assert ALPHAS == (0.5, 1.0, 2.0), "exp fusion in the kernel assumes alphas {0.5, 1, 2}"
    batch_size = int(z_s.shape[0])
    if batch_size < 2:
        raise ValueError("MK-MMD requires batch_size >= 2 (module divides by batch_size-1)")
    assert int(z_t.shape[0]) == batch_size, "z_s and z_t must have the same batch size"

    features = jnp.concatenate([z_s, z_t], axis=0)                 # (N, D), N = 2B
    n, d = features.shape

    # Mean-center (pairwise distances invariant) to avoid cancellation in the closed-form
    # mean distance and to keep the bf16 Gram feed well conditioned.
    x32 = features.astype(jnp.float32)
    xc = x32 - jnp.mean(x32, axis=0, keepdims=True)
    sq = jnp.sum(xc * xc, axis=-1)                                 # (N,), f32
    # Closed-form mean pairwise sq distance over all N^2 pairs (centered => ||sum x||^2 = 0).
    mean_dist = jnp.maximum(2.0 * jnp.mean(sq), 1e-12)             # epsilon-guarded

    # Pre-scale so the kernel does no per-element rescaling:
    #   exponent = (-0.25/m)*sq_i + (-0.25/m)*sq_j + <x_i*s, x_j*s>,  s = sqrt(0.5/m).
    ssq = ((-0.25) / mean_dist) * sq
    ssq_col = ssq.reshape(n, 1)
    ssq_row = ssq.reshape(1, n)
    gram_dtype = jnp.bfloat16 if use_bf16_gram else jnp.float32
    xg = (xc * jnp.sqrt(0.5 / mean_dist)).astype(gram_dtype)

    t, aligned = _pick_tile(batch_size, n, tile_target)
    grid = (n // t, n // t)
    sym = not linear                         # kmat * index_matrix symmetric only for linear=False
    scalar_w = (not linear) and aligned

    if vmem_limit_bytes is None:
        vmem_limit_bytes = _default_vmem_limit_bytes()

    # TODO(synk): for very large D (>= ~2K) the contraction dim should be K-tiled
    # (third grid axis + f32 gram accumulator in VMEM scratch) to stay inside v7x's 64 MiB VMEM.
    out = pl.pallas_call(
        _make_kernel(batch_size, t, linear, scalar_w, sym),
        out_shape=jax.ShapeDtypeStruct((grid[0], 8, 128), jnp.float32),
        grid=grid,
        in_specs=[
            pl.BlockSpec((t, 1), lambda i, j: (i, 0)),             # pre-scaled ||x||^2, rows
            pl.BlockSpec((1, t), lambda i, j: (0, j)),             # pre-scaled ||x||^2, cols
            pl.BlockSpec((t, d), lambda i, j: (i, 0)),             # row feature tile (constant in j)
            pl.BlockSpec((t, d), lambda i, j: (j, 0)),             # col feature tile
        ],
        out_specs=pl.BlockSpec((1, 8, 128), lambda i, j: (i, 0, 0)),  # per-row-tile partial sums
        compiler_params=pltpu.CompilerParams(
            dimension_semantics=("parallel", "arbitrary"),         # i parallel (megacore), j reduce
            vmem_limit_bytes=int(vmem_limit_bytes)),
    )(ssq_col, ssq_row, xg, xg)

    return jnp.sum(out[:, 0, 0]) + 2.0 / float(batch_size - 1)


# ---------------- reference (validation only; not the kernel path) ----------------

def _make_index_matrix(batch_size: int, linear: bool) -> np.ndarray:
    n = 2 * batch_size
    m = np.zeros((n, n), dtype=np.float32)
    if linear:
        for i in range(batch_size):
            s1, s2 = i, (i + 1) % batch_size
            t1, t2 = s1 + batch_size, s2 + batch_size
            m[s1, s2] = 1.0 / batch_size
            m[t1, t2] = 1.0 / batch_size
            m[s1, t2] = -1.0 / batch_size
            m[s2, t1] = -1.0 / batch_size
    else:
        pos = 1.0 / float(batch_size * (batch_size - 1))
        neg = -1.0 / float(batch_size * batch_size)
        m[:, :] = neg
        m[:batch_size, :batch_size] = pos
        m[batch_size:, batch_size:] = pos
    return m


def _reference(z_s, z_t, linear: bool = False):
    batch_size = int(z_s.shape[0])
    x = jnp.concatenate([z_s, z_t], axis=0).astype(jnp.float32)
    sq = jnp.sum(x * x, axis=-1)
    dist = jnp.maximum(sq[:, None] + sq[None, :] - 2.0 * (x @ x.T), 0.0)
    mean_dist = jnp.mean(dist)
    kmat = sum(jnp.exp(-dist / (2.0 * a * mean_dist)) for a in ALPHAS)
    idx = jnp.asarray(_make_index_matrix(batch_size, linear))
    return jnp.sum(kmat * idx) + 2.0 / (batch_size - 1)


if __name__ == "__main__":
    key = jax.random.PRNGKey(0)
    k1, k2, k3, k4 = jax.random.split(key, 4)

    # Small shapes consistent with the module forward: batch=4, hidden=32.
    B, D = 4, 32
    z_s = jax.random.normal(k1, (B, D), dtype=jnp.float32)
    z_t = jax.random.normal(k2, (B, D), dtype=jnp.float32) + 0.5

    # Default (linear=False) path, f32 Gram feed -- tight tolerance.
    loss = jax.block_until_ready(mk_mmd(z_s, z_t, use_bf16_gram=False))
    ref = jax.block_until_ready(_reference(z_s, z_t, linear=False))
    assert jnp.allclose(loss, ref, rtol=5e-4, atol=1e-5), (loss, ref)

    # linear=True variant (analytic per-element weights), f32 Gram feed.
    loss_lin = jax.block_until_ready(mk_mmd(z_s, z_t, linear=True, use_bf16_gram=False))
    ref_lin = jax.block_until_ready(_reference(z_s, z_t, linear=True))
    assert jnp.allclose(loss_lin, ref_lin, rtol=5e-4, atol=1e-5), (loss_lin, ref_lin)

    # Default bf16 MXU feed -- looser tolerance (Gram rounded to bf16).
    loss_bf16 = jax.block_until_ready(mk_mmd(z_s, z_t))
    assert jnp.allclose(loss_bf16, ref, rtol=1e-2, atol=5e-3), (loss_bf16, ref)

    # Larger, boundary-aligned case: exercises the tiled 2x2 grid, scalar tile weights,
    # upper-triangular symmetry gating and the 'parallel' row axis.
    B2, D2 = 128, 64
    z_s2 = jax.random.normal(k3, (B2, D2), dtype=jnp.float32)
    z_t2 = jax.random.normal(k4, (B2, D2), dtype=jnp.float32) + 0.5
    loss2 = jax.block_until_ready(mk_mmd(z_s2, z_t2))
    ref2 = jax.block_until_ready(_reference(z_s2, z_t2, linear=False))
    assert jnp.allclose(loss2, ref2, rtol=2e-2, atol=5e-3), (loss2, ref2)

    print("KERNEL_OK")
</pallas_src>

<mosaic_0001>
module attributes {stable_mosaic.version = 11 : i64} {
  func.func @kernel(%arg0: i32, %arg1: i32, %arg2: memref<8x1xf32, #tpu.memory_space<vmem>>, %arg3: memref<1x8xf32, #tpu.memory_space<vmem>>, %arg4: memref<8x32xf32, #tpu.memory_space<vmem>>, %arg5: memref<8x32xf32, #tpu.memory_space<vmem>>, %arg6: memref<1x8x128xf32, #tpu.memory_space<vmem>>) attributes {dimension_semantics = [#tpu.dimension_semantics<parallel>, #tpu.dimension_semantics<arbitrary>], iteration_bounds = array<i64: 1, 1>, scalar_prefetch = 0 : i64, scratch_operands = 0 : i64, tpu.core_type = #tpu.core_type<tc>, window_params = [{transform_indices = @transform_0, window_bounds = array<i64: 8, 1>}, {transform_indices = @transform_1, window_bounds = array<i64: 1, 8>}, {transform_indices = @transform_2, window_bounds = array<i64: 8, 32>}, {transform_indices = @transform_3, window_bounds = array<i64: 8, 32>}, {transform_indices = @transform_4, window_bounds = array<i64: 1, 8, 128>}]} {
    %c0_i32 = arith.constant 0 : i32
    %0 = arith.cmpi eq, %arg1, %c0_i32 : i32
    %1 = arith.extui %0 : i1 to i32
    %c0_i32_0 = arith.constant 0 : i32
    %2 = arith.cmpi ne, %1, %c0_i32_0 : i32
    scf.if %2 {
      %cst = arith.constant 0.000000e+00 : f32
      %6 = vector.broadcast %cst : f32 to vector<1x8x128xf32>
      %c0 = arith.constant 0 : index
      %c0_2 = arith.constant 0 : index
      %c0_3 = arith.constant 0 : index
      %7 = vector.load %arg6[%c0, %c0_2, %c0_3] : memref<1x8x128xf32, #tpu.memory_space<vmem>>, vector<1x8x128xf32>
      tpu.vector_store %arg6[%c0, %c0_2, %c0_3], %6 {strides = array<i32>} : memref<1x8x128xf32, #tpu.memory_space<vmem>>, vector<1x8x128xf32>,
    } else {
    }
    %3 = arith.cmpi sge, %arg1, %arg0 : i32
    %4 = arith.extui %3 : i1 to i32
    %c0_i32_1 = arith.constant 0 : i32
    %5 = arith.cmpi ne, %4, %c0_i32_1 : i32
    scf.if %5 {
      %c0 = arith.constant 0 : index
      %c0_2 = arith.constant 0 : index
      %6 = vector.load %arg4[%c0, %c0_2] : memref<8x32xf32, #tpu.memory_space<vmem>>, vector<8x32xf32>
      %c0_3 = arith.constant 0 : index
      %c0_4 = arith.constant 0 : index
      %7 = vector.load %arg5[%c0_3, %c0_4] : memref<8x32xf32, #tpu.memory_space<vmem>>, vector<8x32xf32>
      %cst = arith.constant dense<0.000000e+00> : vector<8x8xf32>
      %8 = tpu.matmul %6, %7, %cst {dimension_numbers = #tpu.dot_dimension_numbers<[1], [1], [0], [0], [0, 0, 1, 0], [], []>} : vector<8x32xf32>, vector<8x32xf32>, vector<8x8xf32> -> vector<8x8xf32>
      %c0_5 = arith.constant 0 : index
      %c0_6 = arith.constant 0 : index
      %9 = vector.load %arg2[%c0_5, %c0_6] : memref<8x1xf32, #tpu.memory_space<vmem>>, vector<8x1xf32>
      %10 = vector.broadcast %9 : vector<8x1xf32> to vector<8x8xf32>
      %11 = arith.addf %8, %10 : vector<8x8xf32>
      %c0_7 = arith.constant 0 : index
      %c0_8 = arith.constant 0 : index
      %12 = vector.load %arg3[%c0_7, %c0_8] : memref<1x8xf32, #tpu.memory_space<vmem>>, vector<1x8xf32>
      %13 = vector.broadcast %12 : vector<1x8xf32> to vector<8x8xf32>
      %14 = arith.addf %11, %13 : vector<8x8xf32>
      %cst_9 = arith.constant 0.000000e+00 : f32
      %15 = vector.broadcast %cst_9 : f32 to vector<8x8xf32>
      %16 = arith.minimumf %14, %15 : vector<8x8xf32>
      %17 = math.exp %16 : vector<8x8xf32>
      %18 = arith.mulf %17, %17 : vector<8x8xf32>
      %19 = arith.addf %17, %18 : vector<8x8xf32>
      %20 = arith.mulf %18, %18 : vector<8x8xf32>
      %21 = arith.addf %19, %20 : vector<8x8xf32>
      %c8_i32 = arith.constant 8 : i32
      %22 = arith.muli %arg0, %c8_i32 : i32
      %23 = tpu.iota {dimensions = array<i32: 0>} : vector<8x8xi32>
      %24 = vector.broadcast %22 : i32 to vector<8x8xi32>
      %25 = arith.addi %24, %23 : vector<8x8xi32>
      %c8_i32_10 = arith.constant 8 : i32
      %26 = arith.muli %arg1, %c8_i32_10 : i32
      %27 = tpu.iota {dimensions = array<i32: 1>} : vector<8x8xi32>
      %28 = vector.broadcast %26 : i32 to vector<8x8xi32>
      %29 = arith.addi %28, %27 : vector<8x8xi32>
      %c4_i32 = arith.constant 4 : i32
      %30 = vector.broadcast %c4_i32 : i32 to vector<8x8xi32>
      %31 = arith.cmpi slt, %25, %30 : vector<8x8xi32>
      %c4_i32_11 = arith.constant 4 : i32
      %32 = vector.broadcast %c4_i32_11 : i32 to vector<8x8xi32>
      %33 = arith.cmpi slt, %29, %32 : vector<8x8xi32>
      %34 = arith.xori %31, %33 : vector<8x8xi1>
      %cst_12 = arith.constant dense<true> : vector<8x8xi1>
      %35 = arith.xori %34, %cst_12 : vector<8x8xi1>
      %cst_13 = arith.constant 0.0833333358 : f32
      %cst_14 = arith.constant -6.250000e-02 : f32
      %36 = vector.broadcast %cst_13 : f32 to vector<8x8xf32>
      %37 = vector.broadcast %cst_14 : f32 to vector<8x8xf32>
      %38 = arith.select %35, %36, %37 : vector<8x8xi1>, vector<8x8xf32>
      %39 = arith.mulf %21, %38 : vector<8x8xf32>
      %40 = vector.shape_cast %39 : vector<8x8xf32> to vector<1x8x8xf32>
      %cst_15 = arith.constant dense<0.000000e+00> : vector<1xf32>
      %41 = vector.multi_reduction <add>, %40, %cst_15 [1, 2] : vector<1x8x8xf32> to vector<1xf32>
      %42 = vector.shape_cast %41 : vector<1xf32> to vector<1x1x1xf32>
      %43 = vector.extract %42[0, 0, 0] : f32 from vector<1x1x1xf32>
      %44 = arith.cmpi sgt, %arg1, %arg0 : i32
      %cst_16 = arith.constant 2.000000e+00 : f32
      %cst_17 = arith.constant 1.000000e+00 : f32
      %45 = arith.select %44, %cst_16, %cst_17 : f32
      %46 = arith.mulf %43, %45 : f32
      %c0_18 = arith.constant 0 : index
      %c0_19 = arith.constant 0 : index
      %c0_20 = arith.constant 0 : index
      %47 = vector.load %arg6[%c0_18, %c0_19, %c0_20] : memref<1x8x128xf32, #tpu.memory_space<vmem>>, vector<1x8x128xf32>
      %48 = vector.broadcast %46 : f32 to vector<1x8x128xf32>
      %49 = arith.addf %47, %48 : vector<1x8x128xf32>
      %c0_21 = arith.constant 0 : index
      %c0_22 = arith.constant 0 : index
      %c0_23 = arith.constant 0 : index
      %50 = vector.load %arg6[%c0_21, %c0_22, %c0_23] : memref<1x8x128xf32, #tpu.memory_space<vmem>>, vector<1x8x128xf32>
      tpu.vector_store %arg6[%c0_21, %c0_22, %c0_23], %49 {strides = array<i32>} : memref<1x8x128xf32, #tpu.memory_space<vmem>>, vector<1x8x128xf32>,
    } else {
    }
    return
  }
  func.func @transform_0(%arg0: i32, %arg1: i32) -> (i32, i32) {
    %c0_i32 = arith.constant 0 : i32
    %c0_i32_0 = arith.constant 0 : i32
    return %arg0, %c0_i32 : i32, i32
  }
  func.func @transform_1(%arg0: i32, %arg1: i32) -> (i32, i32) {
    %c0_i32 = arith.constant 0 : i32
    %c0_i32_0 = arith.constant 0 : i32
    return %c0_i32, %arg1 : i32, i32
  }
  func.func @transform_2(%arg0: i32, %arg1: i32) -> (i32, i32) {
    %c0_i32 = arith.constant 0 : i32
    %c0_i32_0 = arith.constant 0 : i32
    return %arg0, %c0_i32 : i32, i32
  }
  func.func @transform_3(%arg0: i32, %arg1: i32) -> (i32, i32) {
    %c0_i32 = arith.constant 0 : i32
    %c0_i32_0 = arith.constant 0 : i32
    return %arg1, %c0_i32 : i32, i32
  }
  func.func @transform_4(%arg0: i32, %arg1: i32) -> (i32, i32, i32) {
    %c0_i32 = arith.constant 0 : i32
    %c0_i32_0 = arith.constant 0 : i32
    %c0_i32_1 = arith.constant 0 : i32
    return %arg0, %c0_i32, %c0_i32_0 : i32, i32, i32
  }
}

</mosaic_0001>

<bundles_post_ra>
// kernel: tpu_custom_call.1
= control target key start
LH: loop header
LB: loop body
LE: loop exit
PB: predicated region body
PF: predicated region fallthrough
CT: control target
= control target key end

     0   :  { %9 = vsyncpa [#allocation3], 0  ;;  %s323_s0 = inlined_call_operand.vmem [shape: f32[8,1], index: 0, kind: input, shape index: {}]   ;;  %s324_s1 = inlined_call_operand.hbm [shape: f32[1,8], index: 1, kind: input, shape index: {}]   ;;  %s325_s2 = inlined_call_operand.vmem [shape: f32[8,32], index: 2, kind: input, shape index: {}]   ;;  %s326_s3 = inlined_call_operand.vmem [shape: f32[8,32], index: 3, kind: input, shape index: {}]   ;;  %s327_s4 = inlined_call_operand.hbm [shape: f32[1,8,128], index: 4, kind: output, shape index: {}]  }
   0x1   :  { %10 = vsyncpa [#allocation4], 0  ;;  %s258_s15 = smov [#allocation2]   ;;  %s210_s19 = scalar_lea.hbm %s324_s1, 16 }
   0x2   :  { %s19_s16 = sshll.u32 %s258_s15, 4  ;;  %p211_p0 = scmp.ne.s32.totalorder %s324_s1, %s210_s19  ;;  %s20_s16 = int_to_ptr.vmem [resolvable:$true] %s19_s16 }
   0x3   :  { %p214_p1 = scmp.lt.u32.totalorder %s210_s19, %s324_s1 }
   0x5   :  { %p216_p2 = pnand %p214_p1, %p211_p0 }
   0x7   :  { %219 = shalt.err (!%p216_p2)
}
   0x8   :  { %s220_s24 = scalar_lea.vmem %s20_s16, 16  ;;  %s224_s25 = scalar_lea.vmem %s20_s16, 32 }
   0x9   :  { %p221_p3 = scmp.ne.s32.totalorder %s20_s16, %s220_s24  ;;  %p225_p4 = scmp.lt.s32.totalorder %s20_s16, %s20_s16 }
   0xa   :  { %p226_p5 = scmp.lt.s32.totalorder %s224_s25, %s220_s24 }
   0xc   :  { %p227_p6 = por %p226_p5, %p225_p4 }
   0xe   :  { %p228_p7 = pnand %p227_p6, %p221_p3 }
  0x10   :  { %231 = shalt.err (!%p228_p7)
}
  0x11   :  { %22 = dma.hbm_to_vmem [thread:$0]  %s324_s1, 16, %s20_s16, [#allocation3]  }
  0x12   :  { %254 = dma.done.wait [#allocation3], 16  }
  0x13   :  { %255 = vsyncadd [#allocation3], 4294967280  ;;  %v259_v0 = vmov 0.0   ;;  %vm260_vm0 = vmmov 0   ;;  %v261_v1 = vmov 0   ;;  %vm47_vm1 = vcmask 261120  }
  0x14   :  { %193 = vmatprep.subr.mxu0 %v259_v0  ;;  %195 = vmatprep.mubr.msk.f32.mxu0 %vm260_vm0, %v259_v0  ;;  %v40_v2 = vld [vmem:[%s326_s3] sm:$0xff]  ;;  %v190_v7 = vld [vmem:[#allocation2] ss:$0 sm:$0xff]  ;;  %v140_v12 = vlaneseq  ;;  %vm262_vm5 = vmmov 1   ;;  %v263_v20 = vmov -0.0625   ;;  %vm155_vm7 = vcmask 64512  }
  0x15   :  { %207 = vset.pattern.permute.xlu0 %v261_v1  ;;  %v41_v3 = vld [vmem:[%s323_s0] sm:$0xff]  ;;  %194 = vmatpush3.xpose.msk.msra.mxu0 %vm47_vm1, %v40_v2  ;;  %s264_s0 = smov [#allocation5]  }
  0x16   :  { %v39_v4 = vld [vmem:[%s325_s2] sm:$0xff]  ;;  %44 = vperm.xlu0 %207, %v41_v3   ;;  %v141_v14 = vshrl.u32 %v140_v12, 7  ;;  %v146_v15 = vand.u32 127, %v140_v12  ;;  %s179_s2 = sshll.u32 %s264_s0, 4  ;;  %s180_s2 = int_to_ptr.vmem [resolvable:$true] %s179_s2 }
  0x17   :  { %s232_s7 = scalar_lea.vmem %s180_s2, 128  ;;  %p237_p9 = scmp.lt.s32.totalorder %s180_s2, %s180_s2 }
  0x18   :  { %196 = vmatmul.mubr.msk.f32.vlgmr.msra.gmra.mrb[0].mxu0 %vm47_vm1, %v39_v4  ;;  %vm149_vm2 = vcmp.lt.s32.totalorder %v141_v14, 4  ;;  %vm150_vm3 = vcmp.lt.s32.totalorder %v146_v15, 4  ;;  %p233_p8 = scmp.ne.s32.totalorder %s180_s2, %s232_s7  ;;  %p238_p10 = scmp.lt.s32.totalorder %s232_s7, %s232_s7 }
  0x19   :  { %vm151_vm4 = vmxor %vm149_vm2, %vm150_vm3 }
  0x1a   :  { %vm152_vm6 = vmxor %vm151_vm4, %vm262_vm5  ;;  %p239_p11 = por %p238_p10, %p237_p9 }
  0x1b   :  { %v153_v21 = vsel %vm152_vm6, 0.083333336, %v263_v20 }
  0x1c   :  { %p240_p12 = pnand %p239_p11, %p233_p8 }
  0x95   :  { %v45_v5 = vpop.permute.xlu0 %44 }
  0xeb   :  { %v120_v6 = vpop.f32.mrb[0].mxu0 }
  0xec   :  { %v121_v8 = vadd.f32 %v120_v6, %v45_v5  ;;  %v197_v9 = vpop.f32.mrb[1].mxu0 }
  0xee   :  { %v131_v10 = vadd.f32 %v190_v7, %v121_v8 }
  0xf0   :  { %v132_v11 = vmin.f32 %v131_v10, 0.0 }
  0xf2   :  { %v133_v13 = vmul.f32 1.442695, %v132_v11 }
  0xf4   :  { %208 = vpow2.f32 %v133_v13 }
  0xfe   :  { %v209_v16 = vpop.eup %208 }
  0xff   :  { %v135_v17 = vmul.f32 %v209_v16, %v209_v16 }
 0x101   :  { %v136_v18 = vadd.f32 %v209_v16, %v135_v17  ;;  %v137_v19 = vmul.f32 %v135_v17, %v135_v17 }
 0x103   :  { %v138_v22 = vadd.f32 %v137_v19, %v136_v18 }
 0x105   :  { %v154_v23 = vmul.f32 %v153_v21, %v138_v22 }
 0x107   :  { %v156_v24 = vsel %vm155_vm7, %v154_v23, 0.0 }
 0x108   :  { %157 = vadd.xlane.f32.xlu0 %v156_v24 }
 0x195   :  { %v158_v25 = vpop.xlane.xlu0 %157 }
 0x196   :  { %v159_v26 = vrot.slane %v158_v25, 4 }
 0x198   :  { %v160_v27 = vadd.f32 %v159_v26, %v158_v25 }
 0x19a   :  { %v161_v28 = vrot.slane %v160_v27, 2 }
 0x19c   :  { %v162_v29 = vadd.f32 %v161_v28, %v160_v27 }
 0x19e   :  { %v163_v30 = vrot.slane %v162_v29, 1 }
 0x1a0   :  { %v164_v31 = vadd.f32 %v163_v30, %v162_v29 }
 0x1a2   :  { %198 = vpush %v164_v31 }
 0x1d3   :  { %s199_s3 = spop %198 }
 0x1d4   :  { %v170_v32 = vstv %s199_s3 }
 0x1d5   :  { %172 = vst [vmem:[#allocation5] sm:$0xff] %v170_v32 }
 0x1d6   :  { %243 = shalt.err (!%p240_p12)
}
 0x1d7   :  { %s244_s10 = scalar_lea.hbm %s327_s4, 128 }
 0x1d8   :  { %p245_p13 = scmp.ne.s32.totalorder %s327_s4, %s244_s10  ;;  %p248_p0 = scmp.lt.u32.totalorder %s244_s10, %s327_s4 }
 0x1da   :  { %p250_p1 = pnand %p248_p0, %p245_p13 }
 0x1dc   :  { %253 = shalt.err (!%p250_p1)
}
 0x1dd   :  { %182 = dma.vmem_to_hbm [thread:$0]  %s180_s2, 128, %s327_s4, [#allocation4]  }
 0x1de   :  { %256 = dma.done.wait [#allocation4], 128  }
 0x1df   :  { %257 = vsyncadd [#allocation4], 4294967168 }
 0x1e0   :  { %186 = vsyncpa [#allocation3], 1 }
 0x1e1   :  { %187 = vsyncpa [#allocation4], 1 }

</bundles_post_ra>
